<compile_context>
chip_gen: v7x
topology: tpu7x:2x2x1
jax: 0.10.0
libtpu: 0.0.40
codegen_flags: <defaults>
</compile_context>

<pallas_src>
import functools

import jax
import jax.numpy as jnp
from jax.experimental import pallas as pl
from jax.experimental.pallas import tpu as pltpu

PARAM_DTYPE = jnp.bfloat16     # weights
ACT_DTYPE = jnp.bfloat16       # token activations
LATENT_DTYPE = jnp.float32     # latent frames / scheduler math
LN_EPS = 1e-5                  # torch.nn.LayerNorm default


# ----------------------------------------------------------------------------
# Helpers
# ----------------------------------------------------------------------------

def _pick_bm(m, target=512):
    """Largest power-of-two row tile (>=8) dividing m, capped so the grid has >=2 steps."""
    target = min(target, max(m // 2, 8))
    for c in (512, 256, 128, 64, 32, 16, 8):
        if c <= target and m % c == 0:
            return c
    return m


def _layernorm_f32(x, g_ref, b_ref):
    """LayerNorm over the last dim with f32 statistics (x is f32)."""
    mu = jnp.mean(x, axis=-1, keepdims=True)
    var = jnp.mean(jnp.square(x - mu), axis=-1, keepdims=True)
    xn = (x - mu) * jax.lax.rsqrt(var + LN_EPS)
    return xn * g_ref[...].astype(jnp.float32) + b_ref[...].astype(jnp.float32)


def _mha_f32(q, k, v, heads, scale):
    """Multi-head attention on 2-D (T, D) bf16 tensors; returns concatenated heads (Tq, D) f32."""
    D = q.shape[-1]
    Dh = D // heads
    outs = []
    for h in range(heads):                              # static unroll
        qh = q[:, h * Dh:(h + 1) * Dh]
        kh = k[:, h * Dh:(h + 1) * Dh]
        vh = v[:, h * Dh:(h + 1) * Dh]
        # q @ k^T without a materialized transpose (bf16 MXU, f32 accumulate).
        s = jax.lax.dot_general(qh, kh, (((1,), (1,)), ((), ())),
                                preferred_element_type=jnp.float32) * scale
        s = s - jnp.max(s, axis=-1, keepdims=True)
        p = jnp.exp(s)
        p = p * pl.reciprocal(jnp.sum(p, axis=-1, keepdims=True), approx=True)
        outs.append(jnp.dot(p.astype(vh.dtype), vh, preferred_element_type=jnp.float32))
    return jnp.concatenate(outs, axis=-1)               # (Tq, D) f32, head-major


# ----------------------------------------------------------------------------
# Pallas kernels
# ----------------------------------------------------------------------------

def _proj_kernel(x_ref, w_ref, b_ref, o_ref, *, act):
    """y = act(x @ w + b)."""
    y = jnp.dot(x_ref[...].astype(w_ref.dtype), w_ref[...],
                preferred_element_type=jnp.float32) + b_ref[...].astype(jnp.float32)
    if act == "gelu":
        y = jax.nn.gelu(y, approximate=True)
    o_ref[...] = y.astype(o_ref.dtype)


def _ln_proj_kernel(x_ref, g_ref, bt_ref, w_ref, b_ref, o_ref, *, act):
    """y = act(LayerNorm(x) @ w + b), LN fused into the matmul kernel (f32 stats)."""
    xn = _layernorm_f32(x_ref[...].astype(jnp.float32), g_ref, bt_ref)
    y = jnp.dot(xn.astype(w_ref.dtype), w_ref[...],
                preferred_element_type=jnp.float32) + b_ref[...].astype(jnp.float32)
    if act == "gelu":
        y = jax.nn.gelu(y, approximate=True)
    o_ref[...] = y.astype(o_ref.dtype)


def _block_kernel(*refs, heads, has_cross):
    """Fully fused pre-norm transformer block for one batch element.

    x += W_o @ MHA(LN1(x));  [x += W_o2 @ XAttn(LN_c(x), cached KV)];  x += MLP(LN2(x)).
    Everything (qkv, scores, MLP hidden) stays in VMEM / vregs.
    """
    if has_cross:
        (x_ref, ln1g, ln1b, wqkv, bqkv, wo1, bo1,
         lncg, lncb, wq2, bq2, kv_ref, wo2, bo2,
         ln2g, ln2b, w1, b1, w2, b2, o_ref) = refs
    else:
        (x_ref, ln1g, ln1b, wqkv, bqkv, wo1, bo1,
         ln2g, ln2b, w1, b1, w2, b2, o_ref) = refs

    D = x_ref.shape[-1]
    scale = 1.0 / float(D // heads) ** 0.5
    x = x_ref[...].astype(jnp.float32)                  # (T, D)

    # --- Self-attention: LN1 + fused QKV proj (packed, lane-dense) ---
    xn = _layernorm_f32(x, ln1g, ln1b)
    qkv = jnp.dot(xn.astype(wqkv.dtype), wqkv[...], preferred_element_type=jnp.float32)
    qkv = (qkv + bqkv[...].astype(jnp.float32)).astype(ACT_DTYPE)
    q, k, v = qkv[:, :D], qkv[:, D:2 * D], qkv[:, 2 * D:]
    attn = _mha_f32(q, k, v, heads, scale)              # (T, D) f32
    # Single head-concatenated output projection (contraction width D, not Dh).
    x = x + jnp.dot(attn.astype(wo1.dtype), wo1[...],
                    preferred_element_type=jnp.float32) + bo1[...].astype(jnp.float32)

    # --- Cross-attention (K/V precomputed & cached, packed (Tc, 2D)) ---
    if has_cross:
        xn = _layernorm_f32(x, lncg, lncb)
        qx = jnp.dot(xn.astype(wq2.dtype), wq2[...], preferred_element_type=jnp.float32)
        qx = (qx + bq2[...].astype(jnp.float32)).astype(ACT_DTYPE)
        kv = kv_ref[...]                                # (Tc, 2D) bf16
        attn = _mha_f32(qx, kv[:, :D], kv[:, D:], heads, scale)
        x = x + jnp.dot(attn.astype(wo2.dtype), wo2[...],
                        preferred_element_type=jnp.float32) + bo2[...].astype(jnp.float32)

    # --- MLP: LN2 + fc1 + GELU + fc2 + residual ---
    xn = _layernorm_f32(x, ln2g, ln2b)
    h = jnp.dot(xn.astype(w1.dtype), w1[...],
                preferred_element_type=jnp.float32) + b1[...].astype(jnp.float32)
    h = jax.nn.gelu(h, approximate=True)
    x = x + jnp.dot(h.astype(w2.dtype), w2[...],
                    preferred_element_type=jnp.float32) + b2[...].astype(jnp.float32)

    o_ref[...] = x.astype(o_ref.dtype)


# ----------------------------------------------------------------------------
# Kernel wrappers
# ----------------------------------------------------------------------------

def pallas_proj(x, w, b, act="none", out_dtype=None):
    M, K = x.shape
    N = w.shape[1]
    out_dtype = out_dtype or ACT_DTYPE
    bm = _pick_bm(M)
    return pl.pallas_call(
        functools.partial(_proj_kernel, act=act),
        out_shape=jax.ShapeDtypeStruct((M, N), out_dtype),
        grid=(M // bm,),
        in_specs=[
            pl.BlockSpec((bm, K), lambda i: (i, 0)),
            pl.BlockSpec((K, N), lambda i: (0, 0)),
            pl.BlockSpec((1, N), lambda i: (0, 0)),
        ],
        out_specs=pl.BlockSpec((bm, N), lambda i: (i, 0)),
        compiler_params=pltpu.CompilerParams(dimension_semantics=("parallel",)),
    )(x, w, b.reshape(1, N))


def pallas_ln_proj(x, ln, w, b, act="none", out_dtype=None):
    M, K = x.shape
    N = w.shape[1]
    out_dtype = out_dtype or ACT_DTYPE
    bm = _pick_bm(M)
    return pl.pallas_call(
        functools.partial(_ln_proj_kernel, act=act),
        out_shape=jax.ShapeDtypeStruct((M, N), out_dtype),
        grid=(M // bm,),
        in_specs=[
            pl.BlockSpec((bm, K), lambda i: (i, 0)),
            pl.BlockSpec((1, K), lambda i: (0, 0)),
            pl.BlockSpec((1, K), lambda i: (0, 0)),
            pl.BlockSpec((K, N), lambda i: (0, 0)),
            pl.BlockSpec((1, N), lambda i: (0, 0)),
        ],
        out_specs=pl.BlockSpec((bm, N), lambda i: (i, 0)),
        compiler_params=pltpu.CompilerParams(dimension_semantics=("parallel",)),
    )(x, ln["g"].reshape(1, K), ln["b"].reshape(1, K), w, b.reshape(1, N))


def _bcast_spec(r, c):
    return pl.BlockSpec((r, c), lambda b: (0, 0))


def pallas_transformer_block(x, p, heads, cond_kv=None):
    """Single-launch fused pre-norm transformer block; grid is parallel over batch."""
    B, T, D = x.shape
    has_cross = cond_kv is not None
    Hd = p["mlp"]["w1"].shape[1]
    tok_spec = pl.BlockSpec((pl.Squeezed(), T, D), lambda b: (b, 0, 0))

    args = [x,
            p["ln1"]["g"].reshape(1, D), p["ln1"]["b"].reshape(1, D),
            p["attn"]["w_qkv"], p["attn"]["b_qkv"].reshape(1, 3 * D),
            p["attn"]["w_o"], p["attn"]["b_o"].reshape(1, D)]
    in_specs = [tok_spec,
                _bcast_spec(1, D), _bcast_spec(1, D),
                _bcast_spec(D, 3 * D), _bcast_spec(1, 3 * D),
                _bcast_spec(D, D), _bcast_spec(1, D)]
    if has_cross:
        Tc = cond_kv.shape[1]
        args += [p["lnc"]["g"].reshape(1, D), p["lnc"]["b"].reshape(1, D),
                 p["xattn"]["w_q"], p["xattn"]["b_q"].reshape(1, D),
                 cond_kv,
                 p["xattn"]["w_o"], p["xattn"]["b_o"].reshape(1, D)]
        in_specs += [_bcast_spec(1, D), _bcast_spec(1, D),
                     _bcast_spec(D, D), _bcast_spec(1, D),
                     pl.BlockSpec((pl.Squeezed(), Tc, 2 * D), lambda b: (b, 0, 0)),
                     _bcast_spec(D, D), _bcast_spec(1, D)]
    args += [p["ln2"]["g"].reshape(1, D), p["ln2"]["b"].reshape(1, D),
             p["mlp"]["w1"], p["mlp"]["b1"].reshape(1, Hd),
             p["mlp"]["w2"], p["mlp"]["b2"].reshape(1, D)]
    in_specs += [_bcast_spec(1, D), _bcast_spec(1, D),
                 _bcast_spec(D, Hd), _bcast_spec(1, Hd),
                 _bcast_spec(Hd, D), _bcast_spec(1, D)]

    return pl.pallas_call(
        functools.partial(_block_kernel, heads=heads, has_cross=has_cross),
        out_shape=jax.ShapeDtypeStruct((B, T, D), ACT_DTYPE),
        grid=(B,),
        in_specs=in_specs,
        out_specs=tok_spec,
        compiler_params=pltpu.CompilerParams(dimension_semantics=("parallel",)),
    )(*args)


# ----------------------------------------------------------------------------
# Parameter init
# ----------------------------------------------------------------------------

def _init_w(key, din, dout):
    return (jax.random.normal(key, (din, dout), jnp.float32) * din ** -0.5).astype(PARAM_DTYPE)


def _zeros(n):
    return jnp.zeros((n,), PARAM_DTYPE)


def init_ln(dim):
    return {"g": jnp.ones((dim,), jnp.float32), "b": jnp.zeros((dim,), jnp.float32)}


def init_self_attn(key, dim):
    k1, k2 = jax.random.split(key)
    return {"w_qkv": _init_w(k1, dim, 3 * dim), "b_qkv": _zeros(3 * dim),
            "w_o": _init_w(k2, dim, dim), "b_o": _zeros(dim)}


def init_cross_attn(key, dim):
    k1, k2, k3 = jax.random.split(key, 3)
    return {"w_q": _init_w(k1, dim, dim), "b_q": _zeros(dim),
            "w_kv": _init_w(k2, dim, 2 * dim), "b_kv": _zeros(2 * dim),
            "w_o": _init_w(k3, dim, dim), "b_o": _zeros(dim)}


def init_mlp(key, dim, hidden):
    k1, k2 = jax.random.split(key)
    return {"w1": _init_w(k1, dim, hidden), "b1": _zeros(hidden),
            "w2": _init_w(k2, hidden, dim), "b2": _zeros(dim)}


def init_block(key, dim, heads, cross=True):
    ks = jax.random.split(key, 3)
    p = {"ln1": init_ln(dim), "attn": init_self_attn(ks[0], dim),
         "ln2": init_ln(dim), "mlp": init_mlp(ks[1], dim, dim * 2)}
    if cross:
        p["lnc"] = init_ln(dim)
        p["xattn"] = init_cross_attn(ks[2], dim)
    return p


# ----------------------------------------------------------------------------
# Patchify helpers (pure reshape/transpose glue)
# ----------------------------------------------------------------------------

def patchify(x, P):
    B, C, H, W = x.shape
    x = x.reshape(B, C, H // P, P, W // P, P)
    x = x.transpose(0, 2, 4, 3, 5, 1)
    return x.reshape(B, (H // P) * (W // P), P * P * C)


def unpatchify(tokens, P, C, H, W):
    B = tokens.shape[0]
    x = tokens.reshape(B, H // P, W // P, P, P, C)
    x = x.transpose(0, 5, 1, 3, 2, 4)
    return x.reshape(B, C, H, W)


# ----------------------------------------------------------------------------
# Synthetic submodules (deterministically initialized)
# ----------------------------------------------------------------------------

class PatchEmbed:
    def __init__(self, key, image_dim, image_size, patch_size, embed_dim):
        self.image_dim, self.image_size, self.patch_size = image_dim, image_size, patch_size
        self.embed_dim = embed_dim
        self.w = _init_w(key, patch_size * patch_size * image_dim, embed_dim)
        self.b = _zeros(embed_dim)
        self._jit_call = jax.jit(self._call_impl)

    def patchify(self, x):
        return patchify(x, self.patch_size)

    def unpatchify(self, tokens):
        H, W = self.image_size
        return unpatchify(tokens, self.patch_size, self.image_dim, H, W)

    def _call_impl(self, x):
        tok = self.patchify(x)
        B, N, Dp = tok.shape
        return pallas_proj(tok.reshape(B * N, Dp), self.w, self.b).reshape(B, N, self.embed_dim)

    def __call__(self, x):
        return self._jit_call(x)


class MaskEmbed:
    def __init__(self, key, num_tokens, embed_dim):
        k1, k2 = jax.random.split(key)
        self.mask_token = (jax.random.normal(k1, (1, 1, embed_dim), jnp.float32) * 0.02).astype(ACT_DTYPE)
        self.bos_token = (jax.random.normal(k2, (1, 1, embed_dim), jnp.float32) * 0.02).astype(ACT_DTYPE)
        self.num_tokens = num_tokens
        self.mask = None
        self.generator = None
        self.pred_ids = None
        self._cursor = 0

    def __call__(self, z):
        B, N, _ = z.shape
        if self.mask is None:
            self.mask = jnp.zeros((B, N), dtype=bool)
            self._cursor = 0
        return jnp.where(self.mask[:, :, None], z, self.mask_token)

    def get_pred_mask(self, num_preds):
        # TODO(synk): reference samples a random prediction order with a torch.Generator;
        # here we use a deterministic raster order.
        B, N = self.mask.shape
        ids = jnp.arange(self._cursor, self._cursor + num_preds, dtype=jnp.int32)
        pred_ids = jnp.broadcast_to(ids[None, :, None], (B, num_preds, 1))
        sel = (jnp.arange(N) >= self._cursor) & (jnp.arange(N) < self._cursor + num_preds)
        pred_mask = jnp.broadcast_to(sel[None, :, None], (B, N, 1)).astype(LATENT_DTYPE)
        self.mask = self.mask | sel[None, :]
        self._cursor += num_preds
        return pred_mask, pred_ids


class VideoPosEmbed:
    def __init__(self, key, num_tokens, embed_dim):
        self.pos = (jax.random.normal(key, (1, num_tokens, embed_dim), jnp.float32) * 0.02).astype(ACT_DTYPE)
        self.embed_dim = embed_dim

    def get_time_embed(self, length):
        d = self.embed_dim
        half = d // 2
        t = jnp.arange(length, dtype=jnp.float32)[:, None]
        freqs = jnp.exp(-jnp.log(10000.0) * jnp.arange(half, dtype=jnp.float32) / half)
        ang = t * freqs[None, :]
        emb = jnp.concatenate([jnp.sin(ang), jnp.cos(ang)], axis=-1)
        return emb[:, None, :].astype(ACT_DTYPE)          # (T, 1, D)

    def __call__(self, c):
        return c + self.pos


class _AttnFlag:
    def __init__(self):
        self.cache_kv = False


class _Block:
    def __init__(self, params):
        self.params = params
        self.attn = _AttnFlag()


def _cond_kv_for_block(cond, blk_params, batch):
    """Project conditioning tokens to packed (B, Tc, 2D) K|V for one block."""
    Bc, Tc, D = cond.shape
    kv = pallas_proj(cond.reshape(Bc * Tc, D),
                     blk_params["xattn"]["w_kv"], blk_params["xattn"]["b_kv"]).reshape(Bc, Tc, 2 * D)
    if Bc != batch:
        kv = jnp.concatenate([kv] * (batch // Bc), axis=0)
    return kv


class VideoEncoder:
    def __init__(self, key, patch_embed, dim, heads, depth=1):
        ks = jax.random.split(key, depth + 1)
        self.patch_embed = patch_embed
        self.heads = heads
        self.blocks = [_Block(init_block(ks[i], dim, heads, cross=True)) for i in range(depth)]
        self.mixer_w = _init_w(ks[-1], dim * 2, dim)
        self.mixer_b = _zeros(dim)
        self._jit_apply_cond = jax.jit(self._apply_cond_impl)
        self._jit_apply_nocond = jax.jit(self._apply_nocond_impl)
        self._jit_mixer = jax.jit(self._mixer_impl)

    def _apply_cond_impl(self, c, cond):
        B = c.shape[0]
        for blk in self.blocks:
            kv = _cond_kv_for_block(cond, blk.params, B)
            c = pallas_transformer_block(c, blk.params, self.heads, cond_kv=kv)
        return c

    def _apply_nocond_impl(self, c):
        # TODO(synk): reference reuses cached cross-attn KV when cache_kv is set; we skip cross-attn.
        for blk in self.blocks:
            c = pallas_transformer_block(c, blk.params, self.heads, cond_kv=None)
        return c

    def __call__(self, c, cond):
        return self._jit_apply_cond(c, cond) if cond is not None else self._jit_apply_nocond(c)

    def _mixer_impl(self, prev, cur):
        B, N, D = cur.shape
        h = jnp.concatenate([prev, cur], axis=-1).reshape(B * N, 2 * D)
        return pallas_proj(h, self.mixer_w, self.mixer_b).reshape(B, N, D)

    def mixer(self, prev, cur):
        return self._jit_mixer(prev, cur)


class ImageEncoder:
    def __init__(self, key, patch_embed, dim, heads, depth=1):
        ks = jax.random.split(key, depth)
        self.patch_embed = patch_embed
        self.image_dim = patch_embed.image_dim
        self.image_size = patch_embed.image_size
        self.heads = heads
        self.blocks = [_Block(init_block(ks[i], dim, heads, cross=True)) for i in range(depth)]
        self._jit_apply = jax.jit(self._apply_impl)

    def _apply_impl(self, z, cond):
        # TODO(synk): reference restricts/caches KV using prev_ids; we attend over all tokens.
        B = z.shape[0]
        for blk in self.blocks:
            kv = _cond_kv_for_block(cond, blk.params, B)
            z = pallas_transformer_block(z, blk.params, self.heads, cond_kv=kv)
        return z

    def __call__(self, z, c, prev_ids):
        return self._jit_apply(z, c)


class ImageDecoder:
    def __init__(self, key, patch_embed, dim, heads, depth=1):
        ks = jax.random.split(key, depth + 3)
        self.patch_embed = patch_embed
        self.heads = heads
        self.dim = dim
        dp = patch_embed.patch_size ** 2 * patch_embed.image_dim
        self.proj_in_w = _init_w(ks[0], dp, dim)
        self.proj_in_b = _zeros(dim)
        self.time_w = _init_w(ks[1], dim, dim)
        self.time_b = _zeros(dim)
        self.blocks = [_Block(init_block(ks[2 + i], dim, heads, cross=True)) for i in range(depth)]
        self.norm_out = init_ln(dim)
        self.proj_out_w = _init_w(ks[-1], dim, dp)
        self.proj_out_b = _zeros(dp)
        self._jit_cond_kvs = jax.jit(self._compute_cond_kvs_impl)
        self._jit_denoise_step = jax.jit(self._denoise_step_impl, static_argnames=("guidance_scale",))

    def _timestep_embed(self, timestep):
        d = self.dim
        half = d // 2
        freqs = jnp.exp(-jnp.log(10000.0) * jnp.arange(half, dtype=jnp.float32) / half)
        ang = timestep[:, None].astype(jnp.float32) * 1000.0 * freqs[None, :]
        emb = jnp.concatenate([jnp.cos(ang), jnp.sin(ang)], axis=-1)
        return pallas_proj(emb, self.time_w, self.time_b)                 # (B, D)

    def _compute_cond_kvs_impl(self, z):
        """Cross-attn K/V of `z` are constant across all diffusion steps — project once per block."""
        Bz = z.shape[0]
        return tuple(_cond_kv_for_block(z, blk.params, Bz) for blk in self.blocks)

    def compute_cond_kvs(self, z):
        return self._jit_cond_kvs(z)

    def _forward_tokens(self, x_img, timestep, cond_kvs):
        tok = self.patch_embed.patchify(x_img)                            # (Bp, N, P*P*C)
        Bp, N, Dp = tok.shape
        h = pallas_proj(tok.reshape(Bp * N, Dp), self.proj_in_w, self.proj_in_b)
        h = h.reshape(Bp, N, self.dim) + self._timestep_embed(timestep)[:, None, :]
        for blk, kv in zip(self.blocks, cond_kvs):
            h = pallas_transformer_block(h, blk.params, self.heads, cond_kv=kv)
        out = pallas_ln_proj(h.reshape(Bp * N, self.dim), self.norm_out,
                             self.proj_out_w, self.proj_out_b, out_dtype=LATENT_DTYPE)
        return out.reshape(Bp, N, Dp)

    def _denoise_step_impl(self, x, t, dsigma, cond_kvs, guidance_scale):
        """One jitted denoise step: pack, decode, CFG, unpatchify and Euler update (fused)."""
        x_pack = jnp.concatenate([x] * 2) if guidance_scale > 1 else x
        timestep = jnp.full((x_pack.shape[0],), t, jnp.float32)
        noise_tok = self._forward_tokens(x_pack, timestep, cond_kvs)
        if guidance_scale > 1:
            cond, uncond = jnp.split(noise_tok, 2, axis=0)
            noise_tok = uncond + (cond - uncond) * guidance_scale
        noise_pred = self.patch_embed.unpatchify(noise_tok)
        return x + dsigma * noise_pred        # Euler update fused (no standalone axpy kernel)

    def denoise_step(self, x, t, dsigma, cond_kvs, guidance_scale):
        return self._jit_denoise_step(x, jnp.asarray(t, jnp.float32),
                                      jnp.asarray(dsigma, jnp.float32), cond_kvs,
                                      guidance_scale=float(guidance_scale))


class FlowEulerScheduler:
    """Simple flow-matching Euler scheduler (deterministic)."""

    def __init__(self):
        self.timesteps = []
        self.sigmas = []
        self._step_index = None

    def set_timesteps(self, num_steps):
        sig = [1.0 - i / float(num_steps) for i in range(num_steps + 1)]
        self.sigmas = sig
        self.timesteps = sig[:-1]


# ----------------------------------------------------------------------------
# Transformer3DModel — same orchestration as the PyTorch reference
# ----------------------------------------------------------------------------

class Transformer3DModel:
    def __init__(self, video_encoder=None, image_encoder=None, image_decoder=None,
                 mask_embed=None, text_embed=None, video_pos_embed=None,
                 motion_embed=None, sample_scheduler=None):
        self.video_encoder = video_encoder
        self.image_encoder = image_encoder
        self.image_decoder = image_decoder
        self.mask_embed = mask_embed
        self.text_embed = text_embed
        self.video_pos_embed = video_pos_embed
        self.motion_embed = motion_embed
        self.sample_scheduler = sample_scheduler

    def progress_bar(self, iterable, enable=True):
        # TODO(synk): tqdm progress bar omitted.
        return iterable

    def preprocess(self, inputs):
        inputs['c'] = inputs.get('c', [])
        if 'x' not in inputs:
            batch_size = inputs.get('batch_size', 1)
            C = self.image_encoder.image_dim
            H, W = self.image_encoder.image_size
            inputs['x'] = jnp.zeros((batch_size, C, H, W), LATENT_DTYPE)
        # TODO(synk): text_embed / motion_embed conditioning paths omitted; `c` is precomputed.
        inputs['c'] = (jnp.concatenate(inputs['c'], axis=1)
                       if len(inputs['c']) > 1 else inputs['c'][0])

    def denoise(self, z, x, guidance_scale=1, generator=None, pred_ids=None):
        self.sample_scheduler._step_index = None
        # Cross-attn K/V of z are constant over the diffusion loop — cache them once.
        cond_kvs = self.image_decoder.compute_cond_kvs(z)
        sigmas = self.sample_scheduler.sigmas
        for i, t in enumerate(self.sample_scheduler.timesteps):
            dsigma = sigmas[i + 1] - sigmas[i]
            x = self.image_decoder.denoise_step(x, t, dsigma, cond_kvs, guidance_scale)
        return self.image_encoder.patch_embed.patchify(x)

    def generate_frame(self, states, inputs):
        guidance_scale = inputs.get('guidance_scale', 1)
        min_gs = inputs.get('min_guidance_scale', guidance_scale)
        max_gs = inputs.get('max_guidance_scale', guidance_scale)
        all_num_preds = [n for n in inputs['num_preds'] if n > 0]
        guidance_end = max_gs if states['t'] else guidance_scale
        guidance_start = max_gs if states['t'] else min_gs
        c = states['c']
        x = jnp.zeros_like(states['x'])
        self.mask_embed.mask = None
        key = inputs['key']
        prev_ids = None
        for i, num_preds in enumerate(self.progress_bar(all_num_preds, inputs.get('tqdm2', False))):
            guidance_level = (i + 1) / len(all_num_preds)
            guidance_scale = (guidance_end - guidance_start) * guidance_level + guidance_start
            z = self.mask_embed(self.image_encoder.patch_embed(x))
            pred_mask, pred_ids = self.mask_embed.get_pred_mask(num_preds)
            pred_ids = jnp.concatenate([pred_ids] * 2) if guidance_scale > 1 else pred_ids
            prev_ids = prev_ids if i else jnp.zeros((pred_ids.shape[0], 0, 1), jnp.int32)
            z = jnp.concatenate([z] * 2) if guidance_scale > 1 else z
            z = self.image_encoder(z, c, prev_ids)
            prev_ids = jnp.concatenate([prev_ids, pred_ids], axis=1)
            nkey = jax.random.fold_in(jax.random.fold_in(key, states['t']), i)
            noise = jax.random.normal(nkey, states['noise'].shape, LATENT_DTYPE)
            sample = self.denoise(z, noise, guidance_scale, None, pred_ids)
            x = x + self.image_encoder.patch_embed.unpatchify(sample * pred_mask)
        states['x'] = x

    def generate_video(self, inputs):
        guidance_scale = inputs.get('guidance_scale', 1)
        max_latent_length = inputs.get('max_latent_length', 1)
        self.sample_scheduler.set_timesteps(inputs.get('num_diffusion_steps', 25))
        states = {'x': inputs['x'], 'noise': inputs['x']}
        latents, self.mask_embed.pred_ids = inputs.get('latents', []), None
        for blk in self.video_encoder.blocks:
            blk.attn.cache_kv = max_latent_length > 1
        time_embed = self.video_pos_embed.get_time_embed(max_latent_length)
        for t in self.progress_bar(range(max_latent_length), inputs.get('tqdm1', True)):
            states['t'] = t
            c = self.video_encoder.patch_embed(states['x'])
            if t == 0:
                c = jnp.broadcast_to(self.mask_embed.bos_token, c.shape)
            c = self.video_pos_embed(c + time_embed[t])
            c = jnp.concatenate([c] * 2) if guidance_scale > 1 else c
            c = self.video_encoder(c, None if t else inputs['c'])
            states['c'] = self.video_encoder.mixer(states['*'], c) if t else c
            states['*'] = states['*'] if t else states['c']
            if t == 0 and latents:
                states['x'] = latents[-1]
            else:
                self.generate_frame(states, inputs)
                latents.append(states['x'])
        for blk in self.video_encoder.blocks:
            blk.attn.cache_kv = False
        inputs['latents'] = latents

    def forward(self, inputs):
        self.preprocess(inputs)
        inputs['latents'] = inputs.pop('latents', [])
        self.generate_video(inputs)
        return {'x': jnp.stack(inputs['latents'], axis=2)}   # (B, C, T, H, W)


# ----------------------------------------------------------------------------
# Main
# ----------------------------------------------------------------------------

if __name__ == "__main__":
    key = jax.random.PRNGKey(0)
    B, C, H, W = 2, 4, 16, 16        # latent frame (NCHW)
    P, D, heads, Lc = 2, 32, 2, 8    # patch size, hidden dim, heads, cond length
    N = (H // P) * (W // P)          # 64 tokens per frame
    T = 2                            # frames

    k_params, k_x, k_c, k_noise = jax.random.split(key, 4)
    ks = jax.random.split(k_params, 8)

    ie_patch = PatchEmbed(ks[0], C, (H, W), P, D)
    ve_patch = PatchEmbed(ks[1], C, (H, W), P, D)
    model = Transformer3DModel(
        video_encoder=VideoEncoder(ks[2], ve_patch, D, heads),
        image_encoder=ImageEncoder(ks[3], ie_patch, D, heads),
        image_decoder=ImageDecoder(ks[4], ie_patch, D, heads),
        mask_embed=MaskEmbed(ks[5], N, D),
        video_pos_embed=VideoPosEmbed(ks[6], N, D),
        sample_scheduler=FlowEulerScheduler(),
    )

    inputs = {
        'x': jax.random.normal(k_x, (B, C, H, W), LATENT_DTYPE),
        'c': [jax.random.normal(k_c, (B, Lc, D), LATENT_DTYPE)],
        'key': k_noise,
        'guidance_scale': 1,
        'max_latent_length': T,
        'num_diffusion_steps': 2,
        'num_preds': [N // 2, N // 2],
        'tqdm1': False,
        'tqdm2': False,
    }

    out = model.forward(inputs)
    jax.block_until_ready(out['x'])
    assert out['x'].shape == (B, C, T, H, W), out['x'].shape
    assert bool(jnp.all(jnp.isfinite(out['x'])))
    print("KERNEL_OK")
</pallas_src>

<mosaic_0001>
module attributes {stable_mosaic.version = 11 : i64} {
  func.func @_proj_kernel(%arg0: i32, %arg1: memref<64x16xf32, #tpu.memory_space<vmem>>, %arg2: memref<16x32xbf16, #tpu.memory_space<vmem>>, %arg3: memref<1x32xbf16, #tpu.memory_space<vmem>>, %arg4: memref<64x32xbf16, #tpu.memory_space<vmem>>) attributes {dimension_semantics = [#tpu.dimension_semantics<parallel>], iteration_bounds = array<i64: 2>, scalar_prefetch = 0 : i64, scratch_operands = 0 : i64, tpu.core_type = #tpu.core_type<tc>, window_params = [{transform_indices = @transform_0, window_bounds = array<i64: 64, 16>}, {pipeline_mode = #tpu.pipeline_mode<synchronous>, transform_indices = @transform_1, window_bounds = array<i64: 16, 32>}, {pipeline_mode = #tpu.pipeline_mode<synchronous>, transform_indices = @transform_2, window_bounds = array<i64: 1, 32>}, {transform_indices = @transform_3, window_bounds = array<i64: 64, 32>}]} {
    %c0 = arith.constant 0 : index
    %c0_0 = arith.constant 0 : index
    %0 = vector.load %arg1[%c0, %c0_0] : memref<64x16xf32, #tpu.memory_space<vmem>>, vector<64x16xf32>
    %1 = arith.truncf %0 : vector<64x16xf32> to vector<64x16xbf16>
    %c0_1 = arith.constant 0 : index
    %c0_2 = arith.constant 0 : index
    %2 = vector.load %arg2[%c0_1, %c0_2] : memref<16x32xbf16, #tpu.memory_space<vmem>>, vector<16x32xbf16>
    %cst = arith.constant dense<0.000000e+00> : vector<64x32xf32>
    %3 = tpu.matmul %1, %2, %cst {dimension_numbers = #tpu.dot_dimension_numbers<[1], [0], [0], [1], [0, 0, 1, 1], [], []>} : vector<64x16xbf16>, vector<16x32xbf16>, vector<64x32xf32> -> vector<64x32xf32>
    %c0_3 = arith.constant 0 : index
    %c0_4 = arith.constant 0 : index
    %4 = vector.load %arg3[%c0_3, %c0_4] : memref<1x32xbf16, #tpu.memory_space<vmem>>, vector<1x32xbf16>
    %5 = arith.extf %4 : vector<1x32xbf16> to vector<1x32xf32>
    %6 = vector.broadcast %5 : vector<1x32xf32> to vector<64x32xf32>
    %7 = arith.addf %3, %6 : vector<64x32xf32>
    %8 = arith.truncf %7 : vector<64x32xf32> to vector<64x32xbf16>
    %c0_5 = arith.constant 0 : index
    %c0_6 = arith.constant 0 : index
    %9 = vector.load %arg4[%c0_5, %c0_6] : memref<64x32xbf16, #tpu.memory_space<vmem>>, vector<64x32xbf16>
    tpu.vector_store %arg4[%c0_5, %c0_6], %8 {strides = array<i32>} : memref<64x32xbf16, #tpu.memory_space<vmem>>, vector<64x32xbf16>,
    return
  }
  func.func @transform_0(%arg0: i32) -> (i32, i32) {
    %c0_i32 = arith.constant 0 : i32
    %c0_i32_0 = arith.constant 0 : i32
    return %arg0, %c0_i32 : i32, i32
  }
  func.func @transform_1(%arg0: i32) -> (i32, i32) {
    %c0_i32 = arith.constant 0 : i32
    %c0_i32_0 = arith.constant 0 : i32
    %c0_i32_1 = arith.constant 0 : i32
    return %c0_i32, %c0_i32_0 : i32, i32
  }
  func.func @transform_2(%arg0: i32) -> (i32, i32) {
    %c0_i32 = arith.constant 0 : i32
    %c0_i32_0 = arith.constant 0 : i32
    %c0_i32_1 = arith.constant 0 : i32
    return %c0_i32, %c0_i32_0 : i32, i32
  }
  func.func @transform_3(%arg0: i32) -> (i32, i32) {
    %c0_i32 = arith.constant 0 : i32
    %c0_i32_0 = arith.constant 0 : i32
    return %arg0, %c0_i32 : i32, i32
  }
}

</mosaic_0001>

<bundles_post_ra>
// kernel: _call_impl.1
= control target key start
LH: loop header
LB: loop body
LE: loop exit
PB: predicated region body
PF: predicated region fallthrough
CT: control target
= control target key end

     0   :  { %s462_s12 = smov 0   ;;  %s497_s0 = inlined_call_operand.vmem [shape: f32[128,16], index: 0, kind: input, shape index: {}]   ;;  %s498_s1 = inlined_call_operand.vmem [shape: bf16[16,32], index: 1, kind: input, shape index: {}]   ;;  %s499_s2 = inlined_call_operand.vmem [shape: bf16[1,32], index: 2, kind: input, shape index: {}]   ;;  %s500_s3 = inlined_call_operand.vmem [shape: bf16[128,32], index: 3, kind: output, shape index: {}]  }
   0x1 LB: > { %s376_s13 = sadd.s32 4294967295, %s440_s12   ;;  %p380_p0 = scmp.ge.s32.totalorder %s440_s12, 1  ;;  %s440_s12 = sphi %s462_s12, %s13_s12  }
   0x2   : > { %p138_p1 = scmp.lt.s32.totalorder %s440_s12, 3 }
   0x4   : > { %p139_p2 = pnand %p380_p0, %p138_p1 }
   0x5   : > { %v433_v0 = vld [vmem:[%s498_s1] sm:$0xff] (!%p139_p2)   ;;  %s381_s16 = sshll.u32 (!%p139_p2), %s376_s13, 3  ;;  %vm201_vm0 = vcmask (!%p139_p2), 130048   ;;  %v191_v13 = vlaneseq (!%p139_p2)  ;;  %vm311_vm1 = vcmask (!%p139_p2), 257024  }
   0x6   : > { %142 = sbr.rel (%p139_p2) target bundleno = 241 (0xf1), region = 32  ;;  %p163_p3 = scmp.lt.s32.totalorder (!%p139_p2), %s381_s16, 15  ;;  %413 = vmatprep.subr.bf16.mxu0 (!%p139_p2), %v433_v0  ;;  %423 = vmatprep.subr.bf16.mxu1 (!%p139_p2), %v433_v0  ;;  %v189_v15 = vld [vmem:[%s499_s2] sm:$0x1] (!%p139_p2) }
   0x7   : > { %414 = vmatpush3.bf16.msra.mxu0 (!%p139_p2), %v433_v0  ;;  %424 = vmatpush3.bf16.msra.mxu1 (!%p139_p2), %v433_v0  ;;  %v192_v14 = vshrl.u32 (!%p139_p2), %v191_v13, 7  ;;  %v190_v16 = vunpack.c.l.bf16 (!%p139_p2), %v189_v15 }
   0x9   : > { %v193_v17 = vsub.s32 (!%p139_p2), 0, %v192_v14 }
   0xb   : > { %v194_v18 = vrot.slane (!%p139_p2), %v190_v16, %v193_v17 }
   0xd   : > { %s502_s16 = smov (!%p163_p3, %s381_s16), 15 }
   0xe   : > { %s382_s17 = sshll.u32 %s502_s16, 3  ;;  %s384_s23 = sshll.u32 %s502_s16, 2 }
   0xf   : > { %s166_s20 = scalar_lea.vmem %s497_s0, %s382_s17  ;;  %s172_s26 = scalar_lea.vmem %s500_s3, %s384_s23 }
  0x10   : > { %v175_v1 = vld [vmem:[%s166_s20] sm:$0xff]  ;;  %v176_v2 = vld [vmem:[%s166_s20 + $0x8] sm:$0xff]  ;;  %v177_v6 = vld [vmem:[%s166_s20 + $0x10] sm:$0xff] }
  0x11   : > { %v179_v3 = vld [vmem:[%s166_s20 + $0x20] sm:$0xff]  ;;  %v183_v4 = vpack.c.bf16 %v176_v2, %v175_v1  ;;  %v180_v5 = vld [vmem:[%s166_s20 + $0x28] sm:$0xff]  ;;  %v178_v7 = vld [vmem:[%s166_s20 + $0x18] sm:$0xff] }
  0x12   : > { %v185_v8 = vpack.c.bf16 %v180_v5, %v179_v3  ;;  %v184_v9 = vpack.c.bf16 %v178_v7, %v177_v6  ;;  %v181_v10 = vld [vmem:[%s166_s20 + $0x30] sm:$0xff]  ;;  %v182_v11 = vld [vmem:[%s166_s20 + $0x38] sm:$0xff] }
  0x13   : > { %415 = vmatprep.mubr.msk.bf16.mxu0 %vm201_vm0, %v183_v4  ;;  %v186_v12 = vpack.c.bf16 %v182_v11, %v181_v10 }
  0x14   : > { %419 = vmatprep.mubr.msk.bf16.mxu1 %vm201_vm0, %v185_v8  ;;  %416 = vmatmul.mubr.msk.bf16.vlgmr.msra.gmra.mrb[0].mxu0 %vm201_vm0, %v184_v9 }
  0x15   : > { %420 = vmatmul.mubr.msk.bf16.vlgmr.msra.gmra.mrb[0].mxu1 %vm201_vm0, %v186_v12 }
  0xe7   : > { %v417_v19 = vpop.f32.mrb[0].mxu0 }
  0xe8   : > { %v257_v20 = vadd.f32 %v417_v19, %v194_v18  ;;  %v421_v21 = vpop.f32.mrb[0].mxu1  ;;  %v248_v22 = vpop.f32.mrb[1].mxu0 }
  0xe9   : > { %v273_v23 = vadd.f32 %v421_v21, %v194_v18  ;;  %v249_v24 = vadd.f32 %v248_v22, %v194_v18  ;;  %v264_v25 = vpop.f32.mrb[1].mxu1  ;;  %v418_v26 = vpop.f32.mrb[2].mxu0 }
  0xea   : > { %v402_v27 = vpack.c.bf16 %v257_v20, %v257_v20  ;;  %v265_v28 = vadd.f32 %v264_v25, %v194_v18  ;;  %v260_v29 = vadd.f32 %v418_v26, %v194_v18  ;;  %v422_v30 = vpop.f32.mrb[2].mxu1  ;;  %v251_v31 = vpop.f32.mrb[3].mxu0 }
  0xeb   : > { %v406_v32 = vpack.c.bf16 %v273_v23, %v273_v23  ;;  %v400_v33 = vpack.c.bf16 %v249_v24, %v249_v24  ;;  %v276_v34 = vadd.f32 %v422_v30, %v194_v18  ;;  %v252_v35 = vadd.f32 %v251_v31, %v194_v18  ;;  %v267_v36 = vpop.f32.mrb[3].mxu1 }
  0xec   : > { %314 = vst.msk [vmem:[%s172_s26 + $0x8] sm:$0xf] %vm311_vm1, %v402_v27  ;;  %v404_v37 = vpack.c.bf16 %v265_v28, %v265_v28  ;;  %v403_v38 = vpack.c.bf16 %v260_v29, %v260_v29  ;;  %v268_v39 = vadd.f32 %v267_v36, %v194_v18 }
  0xed   : > { %318 = vst.msk [vmem:[%s172_s26 + $0x18] sm:$0xf] %vm311_vm1, %v406_v32  ;;  %312 = vst.msk [vmem:[%s172_s26] sm:$0xf] %vm311_vm1, %v400_v33  ;;  %v407_v40 = vpack.c.bf16 %v276_v34, %v276_v34  ;;  %v401_v41 = vpack.c.bf16 %v252_v35, %v252_v35 }
  0xee   : > { %316 = vst.msk [vmem:[%s172_s26 + $0x10] sm:$0xf] %vm311_vm1, %v404_v37  ;;  %315 = vst.msk [vmem:[%s172_s26 + $0xc] sm:$0xf] %vm311_vm1, %v403_v38  ;;  %v405_v42 = vpack.c.bf16 %v268_v39, %v268_v39 }
  0xef   : > { %319 = vst.msk [vmem:[%s172_s26 + $0x1c] sm:$0xf] %vm311_vm1, %v407_v40  ;;  %313 = vst.msk [vmem:[%s172_s26 + $0x4] sm:$0xf] %vm311_vm1, %v401_v41 }
  0xf0   : > { %317 = vst.msk [vmem:[%s172_s26 + $0x14] sm:$0xf] %vm311_vm1, %v405_v42 }
  0xf1 PF: > { %s13_s12 = sadd.s32 1, %s440_s12  }
  0xf2   : > { %p10_p4 = scmp.ge.s32.totalorder %s13_s12, 4  }
  0xf4   :  { %12 = sbr.rel (!%p10_p4) target bundleno = 1 (0x1), region = 62 }

</bundles_post_ra>
